<compile_context>
chip_gen: v7x
topology: tpu7x:2x2x1
jax: 0.10.0
libtpu: 0.0.40
codegen_flags: <defaults>
</compile_context>

<pallas_src>
import math

import jax
import jax.numpy as jnp
from jax.experimental import pallas as pl
from jax.experimental.pallas import tpu as pltpu


def _mlp_packed_kernel(x_ref, w1_ref, b1_ref, w2_ref, b2_ref, o_ref):
    # x_ref : (rt, P*F)   w1_ref: (P*F, P*H)   b1_ref: (1, P*H)
    # w2_ref: (P*H, P*O)  b2_ref: (1, P*O)     o_ref : (rt, P*O)
    h = jnp.dot(x_ref[...], w1_ref[...],
                preferred_element_type=jnp.float32,
                precision=jax.lax.Precision.HIGHEST)
    h = jnp.maximum(h + b1_ref[...], 0.0)                 # bias + ReLU (VPU)
    y = jnp.dot(h, w2_ref[...],
                preferred_element_type=jnp.float32,
                precision=jax.lax.Precision.HIGHEST) + b2_ref[...]
    o_ref[...] = y.astype(o_ref.dtype)


def _choose_packing(in_features, hidden, dtype_bytes=4,
                    w1_limit_bytes=1 << 20, max_pack=128):
    """Batch rows packed per 128-lane row; keep the kron'd fc1 weight small."""
    p = math.lcm(in_features, 128) // in_features
    if p > max_pack:
        return 1
    if (p * in_features) * (p * hidden) * dtype_bytes > w1_limit_bytes:
        return 1
    return p


def make_non_linear_model(w1, b1, w2, b2, *, row_tile=2048):
    """Build a jitted apply(x) equivalent to torch: fc2(relu(fc1(x))).

    w1: [F, H], b1: [H], w2: [H, O], b2: [O]  (transposed vs torch.nn.Linear).
    """
    F, H = w1.shape
    O = w2.shape[1]
    dtype = w1.dtype
    P = _choose_packing(F, H)

    # One-time weight packing (hoisted out of the per-call path):
    # block-diagonal copies so one packed lane-row computes P logical rows.
    eye = jnp.eye(P, dtype=dtype)
    w1_bd = jnp.kron(eye, w1)                             # (P*F, P*H)
    w2_bd = jnp.kron(eye, w2)                             # (P*H, P*O)
    b1_p = jnp.tile(b1, P).reshape(1, P * H)
    b2_p = jnp.tile(b2, P).reshape(1, P * O)

    row_tile = max(8, (int(row_tile) // 8) * 8)

    @jax.jit
    def apply(x):
        B = x.shape[0]

        # Pad batch only to a multiple of P (needed for the zero-copy packing
        # reshape); no padding to a multiple of the row tile -- the ragged
        # last grid step is handled by Pallas boundary masking.
        B_pad = pl.cdiv(B, P) * P
        if B_pad != B:
            x_p = jnp.pad(x, ((0, B_pad - B), (0, 0)))
        else:
            x_p = x
        rows = B_pad // P
        xp = x_p.reshape(rows, P * F)                     # row-major => no copy

        # Row tile: multiple of 8 (f32 sublane); sized so the grid has >= 4
        # steps when possible (2 pipelined steps per TensorCore on v7x), and
        # capped at `row_tile` (1 MiB per x buffer at the default 2048).
        if rows <= 8:
            rt = rows                                     # single full-extent block
        else:
            rt = min(row_tile, ((pl.cdiv(rows, 4) + 7) // 8) * 8)
        grid = (pl.cdiv(rows, rt),)

        out = pl.pallas_call(
            _mlp_packed_kernel,
            out_shape=jax.ShapeDtypeStruct((rows, P * O), dtype),
            grid_spec=pltpu.PrefetchScalarGridSpec(
                num_scalar_prefetch=0,
                grid=grid,
                in_specs=[
                    pl.BlockSpec((rt, P * F), lambda i: (i, 0)),     # x (streamed)
                    pl.BlockSpec((P * F, P * H), lambda i: (0, 0)),  # w1 (resident)
                    pl.BlockSpec((1, P * H), lambda i: (0, 0)),      # b1 (resident)
                    pl.BlockSpec((P * H, P * O), lambda i: (0, 0)),  # w2 (resident)
                    pl.BlockSpec((1, P * O), lambda i: (0, 0)),      # b2 (resident)
                ],
                out_specs=pl.BlockSpec((rt, P * O), lambda i: (i, 0)),
            ),
            compiler_params=pltpu.CompilerParams(
                dimension_semantics=("parallel",),        # megacore-shard batch
            ),
        )(xp, w1_bd, b1_p, w2_bd, b2_p)

        y = out.reshape(B_pad, O)                         # row-major => no copy
        return y if B_pad == B else y[:B]

    return apply


def _torch_linear_init(key, fan_in, shape_w, shape_b):
    """PyTorch-style uniform(-1/sqrt(fan_in), +1/sqrt(fan_in)) init."""
    lim = 1.0 / math.sqrt(fan_in)
    kw, kb = jax.random.split(key)
    w = jax.random.uniform(kw, shape_w, jnp.float32, -lim, lim)
    b = jax.random.uniform(kb, shape_b, jnp.float32, -lim, lim)
    return w, b


if __name__ == "__main__":
    key = jax.random.PRNGKey(0)
    k1, k2, k3 = jax.random.split(key, 3)

    def ref_fn(x, w1, b1, w2, b2):
        return jnp.maximum(x @ w1 + b1, 0.0) @ w2 + b2

    # Case 1: F divides 128 (P = 4), batch gives a multi-step grid (grid = 4).
    F = 32
    w1, b1 = _torch_linear_init(k1, F, (F, 3), (3,))
    w2, b2 = _torch_linear_init(k2, 3, (3, 1), (1,))
    model = make_non_linear_model(w1, b1, w2, b2)

    x = jax.random.normal(k3, (256, F), jnp.float32)
    out = jax.block_until_ready(model(x))
    assert out.shape == (256, 1)
    assert jnp.allclose(out, ref_fn(x, w1, b1, w2, b2), atol=1e-4, rtol=1e-4)

    # Case 2: batch not a multiple of P (small pad + exact slice-back).
    x_small = x[:10]
    out_small = jax.block_until_ready(model(x_small))
    assert out_small.shape == (10, 1)
    assert jnp.allclose(out_small, ref_fn(x_small, w1, b1, w2, b2),
                        atol=1e-4, rtol=1e-4)

    # Case 3: F that does not divide 128 (generalized packing, P = 16) with a
    # ragged last grid step (masked boundary writes, no host-side tile pad).
    F2 = 24
    w1b, b1b = _torch_linear_init(k2, F2, (F2, 3), (3,))
    w2b, b2b = _torch_linear_init(k3, 3, (3, 1), (1,))
    model2 = make_non_linear_model(w1b, b1b, w2b, b2b)
    x2 = jax.random.normal(k1, (200, F2), jnp.float32)
    out2 = jax.block_until_ready(model2(x2))
    assert out2.shape == (200, 1)
    assert jnp.allclose(out2, ref_fn(x2, w1b, b1b, w2b, b2b),
                        atol=1e-4, rtol=1e-4)

    print("KERNEL_OK")
</pallas_src>

<mosaic_0001>
module attributes {stable_mosaic.version = 11 : i64} {
  func.func @_mlp_packed_kernel(%arg0: i32, %arg1: memref<16x128xf32, #tpu.memory_space<vmem>>, %arg2: memref<128x12xf32, #tpu.memory_space<vmem>>, %arg3: memref<1x12xf32, #tpu.memory_space<vmem>>, %arg4: memref<12x4xf32, #tpu.memory_space<vmem>>, %arg5: memref<1x4xf32, #tpu.memory_space<vmem>>, %arg6: memref<16x4xf32, #tpu.memory_space<vmem>>) attributes {dimension_semantics = [#tpu.dimension_semantics<parallel>], iteration_bounds = array<i64: 4>, scalar_prefetch = 0 : i64, scratch_operands = 0 : i64, tpu.core_type = #tpu.core_type<tc>, window_params = [{transform_indices = @transform_0, window_bounds = array<i64: 16, 128>}, {pipeline_mode = #tpu.pipeline_mode<synchronous>, transform_indices = @transform_1, window_bounds = array<i64: 128, 12>}, {pipeline_mode = #tpu.pipeline_mode<synchronous>, transform_indices = @transform_2, window_bounds = array<i64: 1, 12>}, {pipeline_mode = #tpu.pipeline_mode<synchronous>, transform_indices = @transform_3, window_bounds = array<i64: 12, 4>}, {pipeline_mode = #tpu.pipeline_mode<synchronous>, transform_indices = @transform_4, window_bounds = array<i64: 1, 4>}, {transform_indices = @transform_5, window_bounds = array<i64: 16, 4>}]} {
    %c0 = arith.constant 0 : index
    %c0_0 = arith.constant 0 : index
    %0 = vector.load %arg1[%c0, %c0_0] : memref<16x128xf32, #tpu.memory_space<vmem>>, vector<16x128xf32>
    %c0_1 = arith.constant 0 : index
    %c0_2 = arith.constant 0 : index
    %1 = vector.load %arg2[%c0_1, %c0_2] : memref<128x12xf32, #tpu.memory_space<vmem>>, vector<128x12xf32>
    %cst = arith.constant dense<0.000000e+00> : vector<16x12xf32>
    %2 = tpu.matmul %0, %1, %cst {dimension_numbers = #tpu.dot_dimension_numbers<[1], [0], [0], [1], [0, 0, 1, 1], [], []>, precision = #tpu.contract_precision<fp32>} : vector<16x128xf32>, vector<128x12xf32>, vector<16x12xf32> -> vector<16x12xf32>
    %c0_3 = arith.constant 0 : index
    %c0_4 = arith.constant 0 : index
    %3 = vector.load %arg3[%c0_3, %c0_4] : memref<1x12xf32, #tpu.memory_space<vmem>>, vector<1x12xf32>
    %4 = vector.broadcast %3 : vector<1x12xf32> to vector<16x12xf32>
    %5 = arith.addf %2, %4 : vector<16x12xf32>
    %cst_5 = arith.constant 0.000000e+00 : f32
    %6 = vector.broadcast %cst_5 : f32 to vector<16x12xf32>
    %7 = arith.maximumf %5, %6 : vector<16x12xf32>
    %c0_6 = arith.constant 0 : index
    %c0_7 = arith.constant 0 : index
    %8 = vector.load %arg4[%c0_6, %c0_7] : memref<12x4xf32, #tpu.memory_space<vmem>>, vector<12x4xf32>
    %cst_8 = arith.constant dense<0.000000e+00> : vector<16x4xf32>
    %9 = tpu.matmul %7, %8, %cst_8 {dimension_numbers = #tpu.dot_dimension_numbers<[1], [0], [0], [1], [0, 0, 1, 1], [], []>, precision = #tpu.contract_precision<fp32>} : vector<16x12xf32>, vector<12x4xf32>, vector<16x4xf32> -> vector<16x4xf32>
    %c0_9 = arith.constant 0 : index
    %c0_10 = arith.constant 0 : index
    %10 = vector.load %arg5[%c0_9, %c0_10] : memref<1x4xf32, #tpu.memory_space<vmem>>, vector<1x4xf32>
    %11 = vector.broadcast %10 : vector<1x4xf32> to vector<16x4xf32>
    %12 = arith.addf %9, %11 : vector<16x4xf32>
    %c0_11 = arith.constant 0 : index
    %c0_12 = arith.constant 0 : index
    %13 = vector.load %arg6[%c0_11, %c0_12] : memref<16x4xf32, #tpu.memory_space<vmem>>, vector<16x4xf32>
    tpu.vector_store %arg6[%c0_11, %c0_12], %12 {strides = array<i32>} : memref<16x4xf32, #tpu.memory_space<vmem>>, vector<16x4xf32>,
    return
  }
  func.func @transform_0(%arg0: i32) -> (i32, i32) {
    %c0_i32 = arith.constant 0 : i32
    %c0_i32_0 = arith.constant 0 : i32
    return %arg0, %c0_i32 : i32, i32
  }
  func.func @transform_1(%arg0: i32) -> (i32, i32) {
    %c0_i32 = arith.constant 0 : i32
    %c0_i32_0 = arith.constant 0 : i32
    %c0_i32_1 = arith.constant 0 : i32
    return %c0_i32, %c0_i32_0 : i32, i32
  }
  func.func @transform_2(%arg0: i32) -> (i32, i32) {
    %c0_i32 = arith.constant 0 : i32
    %c0_i32_0 = arith.constant 0 : i32
    %c0_i32_1 = arith.constant 0 : i32
    return %c0_i32, %c0_i32_0 : i32, i32
  }
  func.func @transform_3(%arg0: i32) -> (i32, i32) {
    %c0_i32 = arith.constant 0 : i32
    %c0_i32_0 = arith.constant 0 : i32
    %c0_i32_1 = arith.constant 0 : i32
    return %c0_i32, %c0_i32_0 : i32, i32
  }
  func.func @transform_4(%arg0: i32) -> (i32, i32) {
    %c0_i32 = arith.constant 0 : i32
    %c0_i32_0 = arith.constant 0 : i32
    %c0_i32_1 = arith.constant 0 : i32
    return %c0_i32, %c0_i32_0 : i32, i32
  }
  func.func @transform_5(%arg0: i32) -> (i32, i32) {
    %c0_i32 = arith.constant 0 : i32
    %c0_i32_0 = arith.constant 0 : i32
    return %arg0, %c0_i32 : i32, i32
  }
}

</mosaic_0001>

<bundles_post_ra>
// kernel: apply.1
= control target key start
LH: loop header
LB: loop body
LE: loop exit
PB: predicated region body
PF: predicated region fallthrough
CT: control target
= control target key end

     0   :  { %s2203_s18 = smov 0   ;;  %s2561_s0 = inlined_call_operand.vmem [shape: f32[64,128], index: 0, kind: input, shape index: {}]   ;;  %s2562_s1 = inlined_call_operand.vmem [shape: f32[128,12], index: 1, kind: input, shape index: {}]   ;;  %s2563_s2 = inlined_call_operand.vmem [shape: f32[1,12], index: 2, kind: input, shape index: {}]   ;;  %s2564_s3 = inlined_call_operand.vmem [shape: f32[12,4], index: 3, kind: input, shape index: {}]   ;;  %s2565_s4 = inlined_call_operand.vmem [shape: f32[1,4], index: 4, kind: input, shape index: {}]   ;;  %s2566_s5 = inlined_call_operand.vmem [shape: f32[64,4], index: 5, kind: output, shape index: {}]  }
   0x1 LB: > { %s1520_s19 = sadd.s32 4294967295, %s2171_s18   ;;  %p1524_p0 = scmp.ge.s32.totalorder %s2171_s18, 1  ;;  %s2171_s18 = sphi %s2203_s18, %s15_s18  }
   0x2   : > { %p188_p1 = scmp.lt.s32.totalorder %s2171_s18, 5 }
   0x4   : > { %p189_p2 = pnand %p1524_p0, %p188_p1 }
   0x5   : > { %v230_v0 = vld [vmem:[%s2562_s1] sm:$0xff] (!%p189_p2)  ;;  %v231_v1 = vld [vmem:[%s2562_s1 + $0x8] sm:$0xff] (!%p189_p2)  ;;  %v2220_v2 = vld [vmem:[%s2562_s1 + $0x10] sm:$0xff] (!%p189_p2)  ;;  %s1525_s26 = sshll.u32 (!%p189_p2), %s1520_s19, 1  ;;  %vm955_vm0 = vcmask (!%p189_p2), 1043456   ;;  %vm948_vm1 = vcmask (!%p189_p2), 97280  }
   0x6   : > { %192 = sbr.rel (%p189_p2) target bundleno = 571 (0x23b), region = 40  ;;  %v254_v3 = vand.u32 (!%p189_p2), 4294901760, %v230_v0  ;;  %v257_v4 = vand.u32 (!%p189_p2), 4294901760, %v231_v1  ;;  %v2225_v5 = vld [vmem:[%s2562_s1 + $0x18] sm:$0xff] (!%p189_p2)  ;;  %v260_v6 = vand.u32 (!%p189_p2), 4294901760, %v2220_v2  ;;  %v2231_v7 = vld [vmem:[%s2562_s1 + $0x20] sm:$0xff] (!%p189_p2) }
   0x7   : > { %v2236_v8 = vld [vmem:[%s2562_s1 + $0x28] sm:$0xff] (!%p189_p2)  ;;  %v263_v9 = vand.u32 (!%p189_p2), 4294901760, %v2225_v5  ;;  %v266_v11 = vand.u32 (!%p189_p2), 4294901760, %v2231_v7  ;;  %v2250_v14 = vld [vmem:[%s2562_s1 + $0x30] sm:$0xff] (!%p189_p2)  ;;  %v2255_v15 = vld [vmem:[%s2562_s1 + $0x38] sm:$0xff] (!%p189_p2)  ;;  %p217_p3 = scmp.lt.s32.totalorder (!%p189_p2), %s1525_s26, 7 }
   0x8   : > { %v2239_v10 = vpack.c.bf16 (!%p189_p2), %v257_v4, %v254_v3  ;;  %v269_v12 = vand.u32 (!%p189_p2), 4294901760, %v2236_v8  ;;  %v272_v17 = vand.u32 (!%p189_p2), 4294901760, %v2250_v14  ;;  %v275_v18 = vand.u32 (!%p189_p2), 4294901760, %v2255_v15  ;;  %v2276_v19 = vld [vmem:[%s2562_s1 + $0x40] sm:$0xff] (!%p189_p2)  ;;  %v2281_v20 = vld [vmem:[%s2562_s1 + $0x48] sm:$0xff] (!%p189_p2)  ;;  %v2304_v25 = vld [vmem:[%s2562_s1 + $0x50] sm:$0xff] (!%p189_p2) }
   0x9   : > { %v2245_v13 = vpack.c.bf16 (!%p189_p2), %v263_v9, %v260_v6  ;;  %v278_v23 = vand.u32 (!%p189_p2), 4294901760, %v2276_v19  ;;  %v281_v24 = vand.u32 (!%p189_p2), 4294901760, %v2281_v20  ;;  %v2311_v27 = vld [vmem:[%s2562_s1 + $0x58] sm:$0xff] (!%p189_p2)  ;;  %v284_v29 = vand.u32 (!%p189_p2), 4294901760, %v2304_v25  ;;  %v2333_v34 = vld [vmem:[%s2562_s1 + $0x60] sm:$0xff] (!%p189_p2)  ;;  %v2338_v35 = vld [vmem:[%s2562_s1 + $0x68] sm:$0xff] (!%p189_p2) }
   0xa   : > { %1918 = vmatprep.subr.bf16.mxu1 (!%p189_p2), %v2239_v10  ;;  %2014 = vmatprep.subr.bf16.mxu0 (!%p189_p2), %v2239_v10  ;;  %v2269_v16 = vpack.c.bf16 (!%p189_p2), %v269_v12, %v266_v11  ;;  %v2297_v22 = vpack.c.bf16 (!%p189_p2), %v275_v18, %v272_v17  ;;  %v2319_v31 = vsub.f32 (!%p189_p2), %v230_v0, %v254_v3  ;;  %v287_v33 = vand.u32 (!%p189_p2), 4294901760, %v2311_v27  ;;  %v2353_v42 = vld [vmem:[%s2562_s1 + $0x70] sm:$0xff] (!%p189_p2)  ;;  %v2370_v46 = vld [vmem:[%s2562_s1 + $0x78] sm:$0xff] (!%p189_p2) }
   0xb   : > { %1920 = vmatpush3.bf16.msra.mxu1 (!%p189_p2), %v2239_v10  ;;  %2016 = vmatpush3.bf16.msra.mxu0 (!%p189_p2), %v2239_v10  ;;  %v2327_v32 = vpack.c.bf16 (!%p189_p2), %v281_v24, %v278_v23  ;;  %v2341_v37 = vsub.f32 (!%p189_p2), %v231_v1, %v257_v4  ;;  %v290_v40 = vand.u32 (!%p189_p2), 4294901760, %v2333_v34  ;;  %v293_v41 = vand.u32 (!%p189_p2), 4294901760, %v2338_v35 }
   0xc   : > { %1922 = vmatprep.subr.bf16.mxu1 (!%p189_p2), %v2245_v13  ;;  %2018 = vmatprep.subr.bf16.mxu0 (!%p189_p2), %v2245_v13  ;;  %v357_v43 = vand.u32 (!%p189_p2), 4294901760, %v2319_v31  ;;  %v2357_v44 = vsub.f32 (!%p189_p2), %v2220_v2, %v260_v6  ;;  %v2365_v45 = vpack.c.bf16 (!%p189_p2), %v287_v33, %v284_v29  ;;  %v2376_v49 = vsub.f32 (!%p189_p2), %v2225_v5, %v263_v9 }
   0xd   : > { %s2568_s26 = smov (!%p217_p3, %s1525_s26), 7  ;;  %v364_v48 = vand.u32 4294901760, %v2341_v37  ;;  %v296_v50 = vand.u32 4294901760, %v2353_v42  ;;  %v2388_v52 = vpack.c.bf16 %v293_v41, %v290_v40  ;;  %v299_v53 = vand.u32 4294901760, %v2370_v46 }
   0xe   : > { %s1526_s16 = sshll.u32 %s2568_s26, 3  ;;  %v358_v54 = vsub.f32 %v2319_v31, %v357_v43  ;;  %v371_v55 = vand.u32 4294901760, %v2357_v44  ;;  %v378_v57 = vand.u32 4294901760, %v2376_v49  ;;  %v2400_v58 = vsub.f32 %v2231_v7, %v266_v11 }
   0xf   : > { %s220_s20 = scalar_lea.vmem %s2561_s0, %s1526_s16  ;;  %1924 = vmatpush3.bf16.msra.mxu1 %v2245_v13  ;;  %2020 = vmatpush3.bf16.msra.mxu0 %v2245_v13  ;;  %v365_v56 = vsub.f32 %v2341_v37, %v364_v48  ;;  %v2405_v59 = vsub.f32 %v2236_v8, %v269_v12  ;;  %v2411_v61 = vsub.f32 %v2250_v14, %v272_v17  ;;  %s226_s21 = scalar_lea.vmem %s2566_s5, %s1526_s16  ;;  %vm1461_vm2 = vcmask 31744  }
  0x10   : > { %v228_v21 = vld [vmem:[%s220_s20] sm:$0xff]  ;;  %1926 = vmatprep.subr.bf16.mxu1 %v2269_v16  ;;  %2022 = vmatprep.subr.bf16.mxu0 %v2269_v16  ;;  %v229_v30 = vld [vmem:[%s220_s20 + $0x8] sm:$0xff]  ;;  %v2416_v62 = vsub.f32 %v2255_v15, %v275_v18  ;;  %v2424_v63 = vpack.c.bf16 %v299_v53, %v296_v50  ;;  %v359_v0 = vand.u32 4294901760, %v358_v54  ;;  %v372_v1 = vsub.f32 %v2357_v44, %v371_v55 }
  0x11   : > { %v2306_v26 = vand.u32 4294901760, %v228_v21  ;;  %v2344_v39 = vand.u32 4294901760, %v229_v30  ;;  %v366_v2 = vand.u32 4294901760, %v365_v56  ;;  %v379_v3 = vsub.f32 %v2376_v49, %v378_v57 }
  0x12   : > { %v385_v4 = vand.u32 4294901760, %v2400_v58  ;;  %v392_v5 = vand.u32 4294901760, %v2405_v59  ;;  %v399_v7 = vand.u32 4294901760, %v2411_v61  ;;  %v406_v8 = vand.u32 4294901760, %v2416_v62 }
  0x13   : > { %v2314_v28 = vsub.f32 %v228_v21, %v2306_v26  ;;  %1928 = vmatpush3.bf16.msra.mxu1 %v2269_v16  ;;  %2024 = vmatpush3.bf16.msra.mxu0 %v2269_v16  ;;  %v2380_v51 = vsub.f32 %v229_v30, %v2344_v39  ;;  %v2045_v9 = vpack.c.bf16 %v364_v48, %v357_v43  ;;  %v373_v11 = vand.u32 4294901760, %v372_v1 }
  0x14   : > { %1930 = vmatprep.subr.bf16.mxu1 %v2297_v22  ;;  %2026 = vmatprep.subr.bf16.mxu0 %v2297_v22  ;;  %v2440_v12 = vsub.f32 %v2276_v19, %v278_v23  ;;  %v2445_v14 = vsub.f32 %v2281_v20, %v281_v24  ;;  %v1949_v15 = vpack.c.bf16 %v366_v2, %v359_v0  ;;  %v380_v17 = vand.u32 4294901760, %v379_v3 }
  0x15   : > { %v336_v36 = vand.u32 4294901760, %v2314_v28  ;;  %v346_v60 = vand.u32 4294901760, %v2380_v51  ;;  %v386_v18 = vsub.f32 %v2400_v58, %v385_v4  ;;  %v393_v21 = vsub.f32 %v2405_v59, %v392_v5 }
  0x16   : > { %v407_v19 = vsub.f32 %v2416_v62, %v406_v8  ;;  %v2049_v20 = vpack.c.bf16 %v378_v57, %v371_v55  ;;  %v413_v23 = vand.u32 4294901760, %v2440_v12  ;;  %v420_v24 = vand.u32 4294901760, %v2445_v14 }
  0x17   : > { %v337_v38 = vsub.f32 %v2314_v28, %v336_v36  ;;  %1802 = vmatprep.mubr.f32.mxu0 %v336_v36  ;;  %1932 = vmatpush3.bf16.msra.mxu1 %v2297_v22  ;;  %v347_v6 = vsub.f32 %v2380_v51, %v346_v60  ;;  %v400_v36 = vsub.f32 %v2411_v61, %v399_v7  ;;  %v394_v48 = vand.u32 4294901760, %v393_v21 }
  0x18   : > { %2028 = vmatpush3.bf16.msra.mxu0 %v2297_v22  ;;  %1934 = vmatprep.subr.bf16.mxu1 %v2327_v32  ;;  %v1953_v43 = vpack.c.bf16 %v380_v17, %v373_v11  ;;  %v2465_v54 = vsub.f32 %v2311_v27, %v287_v33  ;;  %v408_v56 = vand.u32 4294901760, %v407_v19  ;;  %v2470_v57 = vsub.f32 %v2333_v34, %v290_v40 }
  0x19   : > { %2030 = vmatprep.subr.bf16.mxu0 %v2327_v32  ;;  %v338_v47 = vand.u32 4294901760, %v337_v38  ;;  %v348_v30 = vand.u32 4294901760, %v347_v6  ;;  %v2460_v38 = vsub.f32 %v2304_v25, %v284_v29  ;;  %v401_v55 = vand.u32 4294901760, %v400_v36 }
  0x1a   : > { %v414_v25 = vsub.f32 %v2440_v12, %v413_v23  ;;  %v421_v29 = vsub.f32 %v2445_v14, %v420_v24  ;;  %v2478_v27 = vsub.f32 %v2338_v35, %v293_v41  ;;  %v434_v34 = vand.u32 4294901760, %v2465_v54 }
  0x1b   : > { %1697 = vmatprep.mubr.f32.mxu1 %v338_v47  ;;  %1936 = vmatpush3.bf16.msra.mxu1 %v2327_v32  ;;  %v387_v47 = vand.u32 4294901760, %v386_v18  ;;  %v427_v0 = vand.u32 4294901760, %v2460_v38  ;;  %v1961_v40 = vpack.c.bf16 %v408_v56, %v401_v55  ;;  %v2057_v1 = vpack.c.bf16 %v406_v8, %v399_v7 }
  0x1c   : > { %2032 = vmatpush3.bf16.msra.mxu0 %v2327_v32  ;;  %1938 = vmatprep.subr.bf16.mxu1 %v2365_v45  ;;  %v441_v2 = vand.u32 4294901760, %v2470_v57  ;;  %v415_v3 = vand.u32 4294901760, %v414_v25  ;;  %v422_v6 = vand.u32 4294901760, %v421_v29  ;;  %v448_v41 = vand.u32 4294901760, %v2478_v27 }
  0x1d   : > { %2034 = vmatprep.subr.bf16.mxu0 %v2365_v45  ;;  %v1957_v33 = vpack.c.bf16 %v394_v48, %v387_v47  ;;  %v428_v35 = vsub.f32 %v2460_v38, %v427_v0  ;;  %v2495_v7 = vsub.f32 %v2370_v46, %v299_v53  ;;  %v2061_v8 = vpack.c.bf16 %v420_v24, %v413_v23 }
  0x1e   : > { %v442_v11 = vsub.f32 %v2470_v57, %v441_v2  ;;  %v2065_v46 = vpack.c.bf16 %v434_v34, %v427_v0  ;;  %v2069_v23 = vpack.c.bf16 %v448_v41, %v441_v2  ;;  %v1981_v55 = vpack.c.bf16 %v2341_v37, %v2319_v31 }
  0x1f   : > { %1940 = vmatpush3.bf16.msra.mxu1 %v2365_v45  ;;  %v429_v17 = vand.u32 4294901760, %v428_v35  ;;  %v1985_v56 = vpack.c.bf16 %v2376_v49, %v2357_v44  ;;  %v1989_v31 = vpack.c.bf16 %v2405_v59, %v2400_v58  ;;  %v1993_v37 = vpack.c.bf16 %v2416_v62, %v2411_v61 }
  0x20   : > { %2036 = vmatpush3.bf16.msra.mxu0 %v2365_v45  ;;  %1942 = vmatprep.subr.bf16.mxu1 %v2388_v52  ;;  %v443_v53 = vand.u32 4294901760, %v442_v11 }
  0x21   : > { %2038 = vmatprep.subr.bf16.mxu0 %v2388_v52 }
  0x23   : > { %1944 = vmatpush3.bf16.msra.mxu1 %v2388_v52 }
  0x24   : > { %2040 = vmatpush3.bf16.msra.mxu0 %v2388_v52  ;;  %1946 = vmatprep.subr.bf16.mxu1 %v2424_v63 }
  0x25   : > { %2042 = vmatprep.subr.bf16.mxu0 %v2424_v63 }
  0x27   : > { %1948 = vmatpush3.bf16.msra.mxu1 %v2424_v63 }
  0x28   : > { %2044 = vmatpush3.bf16.msra.mxu0 %v2424_v63  ;;  %1950 = vmatprep.subr.bf16.mxu1 %v1949_v15 }
  0x29   : > { %2046 = vmatprep.subr.bf16.mxu0 %v2045_v9 }
  0x2a   : > { %1698 = vmatmul.mubr.f32.vlgmr.msra.gmra.mrb[0].mxu1 %v348_v30 }
  0x2b   : > { %1803 = vmatmul.mubr.f32.vlgmr.msra.gmra.mrb[0].mxu0 %v346_v60  ;;  %1952 = vmatpush3.bf16.msra.mxu1 %v1949_v15  ;;  %v2053_v60 = vpack.c.bf16 %v392_v5, %v385_v4  ;;  %v435_v4 = vsub.f32 %v2465_v54, %v434_v34  ;;  %v2490_v5 = vsub.f32 %v2353_v42, %v296_v50  ;;  %v462_v50 = vand.u32 4294901760, %v2495_v7 }
  0x2c   : > { %2048 = vmatpush3.bf16.msra.mxu0 %v2045_v9  ;;  %1954 = vmatprep.subr.bf16.mxu1 %v1953_v43  ;;  %v1965_v9 = vpack.c.bf16 %v422_v6, %v415_v3  ;;  %v449_v15 = vsub.f32 %v2478_v27, %v448_v41 }
  0x2d   : > { %2050 = vmatprep.subr.bf16.mxu0 %v2049_v20  ;;  %1732 = vmatprep.mubr.f32.mxu1 %v2306_v26  ;;  %v436_v18 = vand.u32 4294901760, %v435_v4  ;;  %v455_v42 = vand.u32 4294901760, %v2490_v5  ;;  %v463_v19 = vsub.f32 %v2495_v7, %v462_v50 }
  0x2e   : > { %1837 = vmatprep.mubr.f32.mxu0 %v2306_v26  ;;  %v450_v30 = vand.u32 4294901760, %v449_v15 }
  0x2f   : > { %1956 = vmatpush3.bf16.msra.mxu1 %v1953_v43  ;;  %v1969_v21 = vpack.c.bf16 %v436_v18, %v429_v17  ;;  %v456_v36 = vsub.f32 %v2490_v5, %v455_v42  ;;  %v464_v43 = vand.u32 4294901760, %v463_v19  ;;  %v2073_v48 = vpack.c.bf16 %v462_v50, %v455_v42  ;;  %v1530_v42 = vld [vmem:[%s2565_s4] ss:$0 sm:$0xff] }
  0x30   : > { %2052 = vmatpush3.bf16.msra.mxu0 %v2049_v20  ;;  %1958 = vmatprep.subr.bf16.mxu1 %v1957_v33  ;;  %v1973_v20 = vpack.c.bf16 %v450_v30, %v443_v53 }
  0x31   : > { %2054 = vmatprep.subr.bf16.mxu0 %v2053_v60  ;;  %v457_v24 = vand.u32 4294901760, %v456_v36 }
  0x33   : > { %1960 = vmatpush3.bf16.msra.mxu1 %v1957_v33  ;;  %v1977_v47 = vpack.c.bf16 %v464_v43, %v457_v24 }
  0x34   : > { %2056 = vmatpush3.bf16.msra.mxu0 %v2053_v60  ;;  %1962 = vmatprep.subr.bf16.mxu1 %v1961_v40 }
  0x35   : > { %2058 = vmatprep.subr.bf16.mxu0 %v2057_v1 }
  0x37   : > { %1964 = vmatpush3.bf16.msra.mxu1 %v1961_v40 }
  0x38   : > { %2060 = vmatpush3.bf16.msra.mxu0 %v2057_v1  ;;  %1966 = vmatprep.subr.bf16.mxu1 %v1965_v9 }
  0x39   : > { %2062 = vmatprep.subr.bf16.mxu0 %v2061_v8 }
  0x3b   : > { %1968 = vmatpush3.bf16.msra.mxu1 %v1965_v9 }
  0x3c   : > { %2064 = vmatpush3.bf16.msra.mxu0 %v2061_v8  ;;  %1970 = vmatprep.subr.bf16.mxu1 %v1969_v21 }
  0x3d   : > { %2066 = vmatprep.subr.bf16.mxu0 %v2065_v46 }
  0x3f   : > { %1972 = vmatpush3.bf16.msra.mxu1 %v1969_v21 }
  0x40   : > { %2068 = vmatpush3.bf16.msra.mxu0 %v2065_v46  ;;  %1974 = vmatprep.subr.bf16.mxu1 %v1973_v20 }
  0x41   : > { %2070 = vmatprep.subr.bf16.mxu0 %v2069_v23 }
  0x43   : > { %1976 = vmatpush3.bf16.msra.mxu1 %v1973_v20 }
  0x44   : > { %2072 = vmatpush3.bf16.msra.mxu0 %v2069_v23  ;;  %1978 = vmatprep.subr.bf16.mxu1 %v1977_v47 }
  0x45   : > { %2074 = vmatprep.subr.bf16.mxu0 %v2073_v48 }
  0x47   : > { %1980 = vmatpush3.bf16.msra.mxu1 %v1977_v47 }
  0x48   : > { %2076 = vmatpush3.bf16.msra.mxu0 %v2073_v48  ;;  %1982 = vmatprep.subr.bf16.mxu1 %v1981_v55 }
  0x49   : > { %2078 = vmatprep.subr.bf16.mxu0 %v2239_v10 }
  0x4a   : > { %1733 = vmatmul.mubr.f32.vlgmr.msra.gmra.mrb[0].mxu1 %v2344_v39 }
  0x4b   : > { %1838 = vmatmul.mubr.f32.vlgmr.msra.gmra.mrb[0].mxu0 %v2344_v39  ;;  %1984 = vmatpush3.bf16.msra.mxu1 %v1981_v55 }
  0x4c   : > { %2080 = vmatpush3.bf16.msra.mxu0 %v2239_v10  ;;  %1986 = vmatprep.subr.bf16.mxu1 %v1985_v56  ;;  %v1997_v10 = vpack.c.bf16 %v2445_v14, %v2440_v12 }
  0x4d   : > { %2082 = vmatprep.subr.bf16.mxu0 %v2245_v13  ;;  %1767 = vmatprep.mubr.f32.mxu1 %v2314_v28  ;;  %v939_v28 = vld [vmem:[%s2564_s3] sm:$0xff] }
  0x4e   : > { %1872 = vmatprep.mubr.f32.mxu0 %v2306_v26  ;;  %v940_v26 = vld [vmem:[%s2564_s3 + $0x8] sm:$0xf]  ;;  %v960_v44 = vand.u32 4294901760, %v939_v28 }
  0x4f   : > { %1988 = vmatpush3.bf16.msra.mxu1 %v1985_v56 }
  0x50   : > { %2084 = vmatpush3.bf16.msra.mxu0 %v2245_v13  ;;  %1990 = vmatprep.subr.bf16.mxu1 %v1989_v31  ;;  %v2001_v13 = vpack.c.bf16 %v2465_v54, %v2460_v38  ;;  %v1529_v54 = vld [vmem:[%s2563_s2] ss:$0 sm:$0xff] }
  0x51   : > { %2086 = vmatprep.subr.bf16.mxu0 %v2269_v16 }
  0x53   : > { %1992 = vmatpush3.bf16.msra.mxu1 %v1989_v31 }
  0x54   : > { %2088 = vmatpush3.bf16.msra.mxu0 %v2269_v16  ;;  %1994 = vmatprep.subr.bf16.mxu1 %v1993_v37  ;;  %v2005_v16 = vpack.c.bf16 %v2478_v27, %v2470_v57 }
  0x55   : > { %2090 = vmatprep.subr.bf16.mxu0 %v2297_v22 }
  0x57   : > { %1996 = vmatpush3.bf16.msra.mxu1 %v1993_v37 }
  0x58   : > { %2092 = vmatpush3.bf16.msra.mxu0 %v2297_v22  ;;  %1998 = vmatprep.subr.bf16.mxu1 %v1997_v10  ;;  %v2009_v22 = vpack.c.bf16 %v2495_v7, %v2490_v5 }
  0x59   : > { %2094 = vmatprep.subr.bf16.mxu0 %v2327_v32 }
  0x5b   : > { %2000 = vmatpush3.bf16.msra.mxu1 %v1997_v10 }
  0x5c   : > { %2096 = vmatpush3.bf16.msra.mxu0 %v2327_v32  ;;  %2002 = vmatprep.subr.bf16.mxu1 %v2001_v13  ;;  %v957_v32 = vsel %vm955_vm0, %v940_v26, 0 }
  0x5d   : > { %2098 = vmatprep.subr.bf16.mxu0 %v2365_v45 }
  0x5f   : > { %2004 = vmatpush3.bf16.msra.mxu1 %v2001_v13 }
  0x60   : > { %2100 = vmatpush3.bf16.msra.mxu0 %v2365_v45  ;;  %2006 = vmatprep.subr.bf16.mxu1 %v2005_v16  ;;  %v963_v45 = vand.u32 4294901760, %v957_v32 }
  0x61   : > { %2102 = vmatprep.subr.bf16.mxu0 %v2388_v52 }
  0x62   : > { %v2109_v49 = vpack.c.bf16 %v963_v45, %v960_v44 }
  0x63   : > { %2008 = vmatpush3.bf16.msra.mxu1 %v2005_v16 }
  0x64   : > { %2104 = vmatpush3.bf16.msra.mxu0 %v2388_v52  ;;  %2010 = vmatprep.subr.bf16.mxu1 %v2009_v22  ;;  %v1055_v52 = vsub.f32 %v957_v32, %v963_v45 }
  0x65   : > { %2106 = vmatprep.subr.bf16.mxu0 %v2424_v63 }
  0x66   : > { %v1056_v58 = vand.u32 4294901760, %v1055_v52 }
  0x67   : > { %2012 = vmatpush3.bf16.msra.mxu1 %v2009_v22 }
  0x68   : > { %2108 = vmatpush3.bf16.msra.mxu0 %v2424_v63  ;;  %2122 = vmatprep.subr.bf16.mxu1 %v2109_v49  ;;  %v1057_v61 = vsub.f32 %v1055_v52, %v1056_v58 }
  0x69   : > { %2110 = vmatprep.subr.bf16.mxu0 %v2109_v49 }
  0x6a   : > { %1768 = vmatmul.mubr.f32.vlgmr.msra.gmra.mrb[0].mxu1 %v2380_v51  ;;  %v1048_v51 = vsub.f32 %v939_v28, %v960_v44  ;;  %v1058_v12 = vand.u32 4294901760, %v1057_v61 }
  0x6b   : > { %1873 = vmatmul.mubr.f32.vlgmr.msra.gmra.mrb[0].mxu0 %v2344_v39  ;;  %2124 = vmatpush3.bf16.msra.mxu1 %v2109_v49 }
  0x6c   : > { %2112 = vmatpush3.bf16.msra.mxu0 %v2109_v49  ;;  %v1049_v39 = vand.u32 4294901760, %v1048_v51  ;;  %v2117_v38 = vpack.c.bf16 %v1055_v52, %v1048_v51 }
  0x6e   : > { %v1050_v59 = vsub.f32 %v1048_v51, %v1049_v39  ;;  %v2125_v62 = vpack.c.bf16 %v1056_v58, %v1049_v39 }
  0x70   : > { %v1051_v63 = vand.u32 4294901760, %v1050_v59  ;;  %2126 = vmatprep.subr.bf16.mxu1 %v2125_v62 }
  0x72   : > { %v2113_v14 = vpack.c.bf16 %v1058_v12, %v1051_v63 }
  0x74   : > { %2114 = vmatprep.subr.bf16.mxu0 %v2113_v14 }
 0x13d   : > { %v1769_v57 = vpop.f32.mrb[0].mxu1 }
 0x13e   : > { %v1874_v25 = vpop.f32.mrb[0].mxu0  ;;  %v2133_v29 = vadd.f32 %v1769_v57, %v1529_v54  ;;  %v611_v0 = vpop.f32.mrb[1].mxu1 }
 0x13f   : > { %v927_v27 = vpop.f32.mrb[1].mxu0  ;;  %v2135_v33 = vadd.f32 %v1529_v54, %v611_v0 }
 0x140   : > { %v2134_v60 = vadd.f32 %v2133_v29, %v1874_v25 }
 0x141   : > { %v2136_v34 = vadd.f32 %v2135_v33, %v927_v27 }
 0x142   : > { %v938_v40 = vmax.f32 %v2134_v60, 0.0 }
 0x143   : > { %v937_v1 = vmax.f32 %v2136_v34, 0.0 }
 0x144   : > { %v953_v2 = vsel %vm948_vm1, %v938_v40, 0 }
 0x145   : > { %v1036_v3 = vand.u32 4294901760, %v953_v2  ;;  %v950_v6 = vsel %vm948_vm1, %v937_v1, 0 }
 0x146   : > { %v1026_v35 = vand.u32 4294901760, %v950_v6 }
 0x147   : > { %v1037_v41 = vsub.f32 %v953_v2, %v1036_v3 }
 0x148   : > { %v1027_v4 = vsub.f32 %v950_v6, %v1026_v35 }
 0x149   : > { %v1038_v5 = vand.u32 4294901760, %v1037_v41 }
 0x14a   : > { %v1028_v7 = vand.u32 4294901760, %v1027_v4 }
 0x14b   : > { %v1039_v8 = vsub.f32 %v1037_v41, %v1038_v5 }
 0x14c   : > { %1900 = vmatprep.mubr.f32.mxu1 %v1028_v7  ;;  %v1029_v9 = vsub.f32 %v1027_v4, %v1028_v7 }
 0x14d   : > { %1901 = vmatmul.mubr.f32.vlgmr.msra.gmra.mrb[2].mxu1 %v1038_v5  ;;  %v1040_v15 = vand.u32 4294901760, %v1039_v8 }
 0x14e   : > { %1907 = vmatprep.mubr.f32.mxu1 %v1026_v35  ;;  %v1030_v11 = vand.u32 4294901760, %v1029_v9  ;;  %2128 = vmatpush3.bf16.msra.mxu1 %v2125_v62 }
 0x14f   : > { %2130 = vmatprep.subr.bf16.mxu1 %v2109_v49 }
 0x150   : > { %1879 = vmatprep.mubr.f32.mxu0 %v1030_v11 }
 0x151   : > { %1880 = vmatmul.mubr.f32.vlgmr.msra.gmra.mrb[2].mxu0 %v1040_v15 }
 0x152   : > { %2116 = vmatpush3.bf16.msra.mxu0 %v2113_v14  ;;  %1886 = vmatprep.mubr.f32.mxu0 %v1026_v35 }
 0x153   : > { %2118 = vmatprep.subr.bf16.mxu0 %v2117_v38 }
 0x155   : > { %1908 = vmatmul.mubr.f32.vlgmr.msra.gmra.mrb[2].mxu1 %v1036_v3 }
 0x156   : > { %1914 = vmatprep.mubr.f32.mxu1 %v1026_v35  ;;  %2132 = vmatpush3.bf16.msra.mxu1 %v2109_v49 }
 0x159   : > { %1887 = vmatmul.mubr.f32.vlgmr.msra.gmra.mrb[2].mxu0 %v1036_v3 }
 0x15a   : > { %2120 = vmatpush3.bf16.msra.mxu0 %v2117_v38  ;;  %1893 = vmatprep.mubr.f32.mxu0 %v1027_v4 }
 0x15d   : > { %1915 = vmatmul.mubr.f32.vlgmr.msra.gmra.mrb[2].mxu1 %v1036_v3 }
 0x161   : > { %1894 = vmatmul.mubr.f32.vlgmr.msra.gmra.mrb[2].mxu0 %v1037_v41 }
 0x230   : > { %v1916_v17 = vpop.f32.mrb[2].mxu1 }
 0x231   : > { %v1451_v18 = vpop.f32.mrb[3].mxu1 }
 0x234   : > { %v1895_v50 = vpop.f32.mrb[2].mxu0 }
 0x235   : > { %v2137_v46 = vadd.f32 %v1895_v50, %v1530_v42  ;;  %v1205_v53 = vpop.f32.mrb[3].mxu0 }
 0x236   : > { %v2139_v21 = vadd.f32 %v1530_v42, %v1205_v53 }
 0x237   : > { %v2138_v30 = vadd.f32 %v2137_v46, %v1916_v17 }
 0x238   : > { %v2140_v36 = vadd.f32 %v2139_v21, %v1451_v18 }
 0x239   : > { %1463 = vst.msk [vmem:[%s226_s21 + $0x8] sm:$0xff] %vm1461_vm2, %v2138_v30 }
 0x23a   : > { %1462 = vst.msk [vmem:[%s226_s21] sm:$0xff] %vm1461_vm2, %v2140_v36 }
 0x23b PF: > { %s15_s18 = sadd.s32 1, %s2171_s18  }
 0x23c   : > { %p12_p4 = scmp.ge.s32.totalorder %s15_s18, 6  }
 0x23e   :  { %14 = sbr.rel (!%p12_p4) target bundleno = 1 (0x1), region = 70 }

</bundles_post_ra>
